<compile_context>
chip_gen: v7x
topology: tpu7x:2x2x1
jax: 0.10.0
libtpu: 0.0.40
codegen_flags: <defaults>
</compile_context>

<pallas_src>
import functools

import jax
import jax.numpy as jnp
from jax.experimental import pallas as pl
from jax.experimental.pallas import tpu as pltpu


def _cos_npi_add_kernel(x_ref, o_ref, *, block_s):
    # Global sequence offset of this block.
    s0 = pl.program_id(0) * block_s
    # Per-row positional encoding: cos(i*pi) = +1 for even i, -1 for odd i.
    # Computed only on a (block_s, 1) column in f32, cast once, then broadcast
    # along the flattened lane axis by the add (VPU work hidden under DMA).
    row = jax.lax.broadcasted_iota(jnp.int32, (block_s, 1), 0) + s0
    pe = (1.0 - 2.0 * (row & 1).astype(jnp.float32)).astype(o_ref.dtype)
    o_ref[...] = x_ref[...] + pe


def cosine_npi_positional_encoding(x, *, max_len=5000, block_s=None):
    """x: (seq_len, batch, d_model). Returns x + pe[:seq_len] (dropout = identity)."""
    S, B, D = x.shape
    assert S <= max_len, "sequence length exceeds max_len"

    # Flatten (B, D) into a single lane-dense axis (free for contiguous row-major x).
    C = B * D
    x2 = x.reshape(S, C)

    if block_s is None:
        itemsize = jnp.dtype(x.dtype).itemsize
        bytes_per_row = max(C * itemsize, 1)
        target_bytes = 4 * 1024 * 1024  # ~4 MiB per block (x2 in/out, x2 double-buffer)
        block_s = max(1, target_bytes // bytes_per_row)
        if block_s >= S:
            block_s = S  # whole array in one block (block dim == full dim is legal)
        else:
            block_s = max(8, (block_s // 8) * 8)  # keep sublane-aligned blocks

    grid = (pl.cdiv(S, block_s),)  # partial last block handled by Pallas (masked store)

    kernel = functools.partial(_cos_npi_add_kernel, block_s=block_s)
    out2 = pl.pallas_call(
        kernel,
        out_shape=jax.ShapeDtypeStruct((S, C), x.dtype),
        grid=grid,
        in_specs=[pl.BlockSpec((block_s, C), lambda i: (i, 0))],
        out_specs=pl.BlockSpec((block_s, C), lambda i: (i, 0)),
        compiler_params=pltpu.CompilerParams(
            dimension_semantics=("parallel",),
        ),
    )(x2)
    return out2.reshape(S, B, D)


def _reference(x):
    S = x.shape[0]
    i = jnp.arange(S, dtype=jnp.float32)
    pe = jnp.cos(i * jnp.pi).reshape(S, 1, 1)
    return x + pe.astype(x.dtype)


if __name__ == "__main__":
    key = jax.random.PRNGKey(0)
    seq_len, batch, d_model = 8, 2, 32
    x = jax.random.normal(key, (seq_len, batch, d_model), dtype=jnp.float32)

    out = cosine_npi_positional_encoding(x, max_len=5000)
    out = jax.block_until_ready(out)

    ref = _reference(x)
    assert out.shape == (seq_len, batch, d_model)
    assert jnp.allclose(out, ref, atol=1e-5), "mismatch vs reference"
    print("KERNEL_OK")
</pallas_src>

<mosaic_0001>
module attributes {stable_mosaic.version = 11 : i64} {
  func.func @_cos_npi_add_kernel(%arg0: i32, %arg1: memref<8x64xf32, #tpu.memory_space<vmem>>, %arg2: memref<8x64xf32, #tpu.memory_space<vmem>>) attributes {dimension_semantics = [#tpu.dimension_semantics<parallel>], iteration_bounds = array<i64: 1>, scalar_prefetch = 0 : i64, scratch_operands = 0 : i64, tpu.core_type = #tpu.core_type<tc>, window_params = [{transform_indices = @transform_0, window_bounds = array<i64: 8, 64>}, {transform_indices = @transform_1, window_bounds = array<i64: 8, 64>}]} {
    %c8_i32 = arith.constant 8 : i32
    %0 = arith.muli %arg0, %c8_i32 : i32
    %1 = tpu.iota {dimensions = array<i32: 0>} : vector<8x1xi32>
    %2 = vector.broadcast %0 : i32 to vector<8x1xi32>
    %3 = arith.addi %1, %2 : vector<8x1xi32>
    %c1_i32 = arith.constant 1 : i32
    %4 = vector.broadcast %c1_i32 : i32 to vector<8x1xi32>
    %5 = arith.andi %3, %4 : vector<8x1xi32>
    %6 = arith.sitofp %5 : vector<8x1xi32> to vector<8x1xf32>
    %cst = arith.constant 2.000000e+00 : f32
    %7 = vector.broadcast %cst : f32 to vector<8x1xf32>
    %8 = arith.mulf %7, %6 : vector<8x1xf32>
    %cst_0 = arith.constant 1.000000e+00 : f32
    %9 = vector.broadcast %cst_0 : f32 to vector<8x1xf32>
    %10 = arith.subf %9, %8 : vector<8x1xf32>
    %c0 = arith.constant 0 : index
    %c0_1 = arith.constant 0 : index
    %11 = vector.load %arg1[%c0, %c0_1] : memref<8x64xf32, #tpu.memory_space<vmem>>, vector<8x64xf32>
    %12 = vector.broadcast %10 : vector<8x1xf32> to vector<8x64xf32>
    %13 = arith.addf %11, %12 : vector<8x64xf32>
    %c0_2 = arith.constant 0 : index
    %c0_3 = arith.constant 0 : index
    %14 = vector.load %arg2[%c0_2, %c0_3] : memref<8x64xf32, #tpu.memory_space<vmem>>, vector<8x64xf32>
    tpu.vector_store %arg2[%c0_2, %c0_3], %13 {strides = array<i32>} : memref<8x64xf32, #tpu.memory_space<vmem>>, vector<8x64xf32>,
    return
  }
  func.func @transform_0(%arg0: i32) -> (i32, i32) {
    %c0_i32 = arith.constant 0 : i32
    %c0_i32_0 = arith.constant 0 : i32
    return %arg0, %c0_i32 : i32, i32
  }
  func.func @transform_1(%arg0: i32) -> (i32, i32) {
    %c0_i32 = arith.constant 0 : i32
    %c0_i32_0 = arith.constant 0 : i32
    return %arg0, %c0_i32 : i32, i32
  }
}

</mosaic_0001>

<bundles_post_ra>
// kernel: tpu_custom_call.1
= control target key start
LH: loop header
LB: loop body
LE: loop exit
PB: predicated region body
PF: predicated region fallthrough
CT: control target
= control target key end

     0   :  { %6 = vsyncpa [#allocation3], 0  ;;  %s135_s0 = inlined_call_operand.hbm [shape: f32[8,64], index: 0, kind: input, shape index: {}]   ;;  %s136_s1 = inlined_call_operand.hbm [shape: f32[8,64], index: 1, kind: output, shape index: {}]  }
   0x1   :  { %7 = vsyncpa [#allocation4], 0  ;;  %s99_s6 = smov [#allocation2]   ;;  %s51_s10 = scalar_lea.hbm %s135_s0, 128 }
   0x2   :  { %s14_s7 = sshll.u32 %s99_s6, 4  ;;  %p52_p0 = scmp.ne.s32.totalorder %s135_s0, %s51_s10  ;;  %s15_s7 = int_to_ptr.vmem [resolvable:$true] %s14_s7 }
   0x3   :  { %p55_p1 = scmp.lt.u32.totalorder %s51_s10, %s135_s0 }
   0x5   :  { %p57_p2 = pnand %p55_p1, %p52_p0 }
   0x7   :  { %60 = shalt.err (!%p57_p2)
}
   0x8   :  { %s61_s15 = scalar_lea.vmem %s15_s7, 128  ;;  %p66_p4 = scmp.lt.s32.totalorder %s15_s7, %s15_s7 }
   0x9   :  { %p62_p3 = scmp.ne.s32.totalorder %s15_s7, %s61_s15  ;;  %p67_p5 = scmp.lt.s32.totalorder %s61_s15, %s61_s15 }
   0xb   :  { %p68_p6 = por %p67_p5, %p66_p4 }
   0xd   :  { %p69_p7 = pnand %p68_p6, %p62_p3 }
   0xf   :  { %72 = shalt.err (!%p69_p7)
}
  0x10   :  { %17 = dma.hbm_to_vmem [thread:$0]  %s135_s0, 128, %s15_s7, [#allocation3]  }
  0x11   :  { %95 = dma.done.wait [#allocation3], 128  }
  0x12   :  { %96 = vsyncadd [#allocation3], 4294967168  ;;  %v22_v0 = vlaneseq  ;;  %v30_v5 = vld [vmem:[#allocation2] sm:$0xff]  ;;  %s100_s18 = smov [#allocation5]   ;;  %vm32_vm0 = vcmask 523264  }
  0x13   :  { %s40_s19 = sshll.u32 %s100_s18, 4  ;;  %s41_s19 = int_to_ptr.vmem [resolvable:$true] %s40_s19 }
  0x14   :  { %v23_v1 = vshrl.u32 %v22_v0, 7  ;;  %s73_s20 = scalar_lea.vmem %s41_s19, 128  ;;  %p78_p9 = scmp.lt.s32.totalorder %s41_s19, %s41_s19 }
  0x15   :  { %p74_p8 = scmp.ne.s32.totalorder %s41_s19, %s73_s20  ;;  %p79_p10 = scmp.lt.s32.totalorder %s73_s20, %s73_s20 }
  0x16   :  { %v26_v2 = vand.u32 1, %v23_v1 }
  0x17   :  { %p80_p11 = por %p79_p10, %p78_p9 }
  0x18   :  { %v27_v3 = vcvt.s32.f32 %v26_v2 }
  0x19   :  { %p81_p12 = pnand %p80_p11, %p74_p8 }
  0x1a   :  { %v28_v4 = vmul.f32 2.0, %v27_v3 }
  0x1c   :  { %v29_v6 = vsub.f32 1.0, %v28_v4 }
  0x1e   :  { %v31_v7 = vadd.f32 %v30_v5, %v29_v6 }
  0x20   :  { %33 = vst.msk [vmem:[#allocation5] sm:$0xff] %vm32_vm0, %v31_v7 }
  0x21   :  { %84 = shalt.err (!%p81_p12)
}
  0x22   :  { %s85_s22 = scalar_lea.hbm %s136_s1, 128 }
  0x23   :  { %p86_p13 = scmp.ne.s32.totalorder %s136_s1, %s85_s22  ;;  %p89_p0 = scmp.lt.u32.totalorder %s85_s22, %s136_s1 }
  0x25   :  { %p91_p1 = pnand %p89_p0, %p86_p13 }
  0x27   :  { %94 = shalt.err (!%p91_p1)
}
  0x28   :  { %43 = dma.vmem_to_hbm [thread:$0]  %s41_s19, 128, %s136_s1, [#allocation4]  }
  0x29   :  { %97 = dma.done.wait [#allocation4], 128  }
  0x2a   :  { %98 = vsyncadd [#allocation4], 4294967168 }
  0x2b   :  { %47 = vsyncpa [#allocation3], 1 }
  0x2c   :  { %48 = vsyncpa [#allocation4], 1 }

</bundles_post_ra>
